<compile_context>
chip_gen: v6e
topology: v6e:2x2x1
jax: 0.10.0
libtpu: 0.0.40
codegen_flags: <defaults>
</compile_context>

<pallas_src>
import functools

import jax
import jax.numpy as jnp
from jax import lax
from jax.experimental import pallas as pl
from jax.experimental.pallas import tpu as pltpu

LANE = 128
SUBLANE = 8
MAX_BLOCK_ROWS = 2048  # 2048 x 128 x 4B = 1 MiB per f32 input per grid step


def _dice_bce_kernel(inp_ref, tgt_ref, acc_ref, *,
                     block_rows, rows_valid, blocks_per_core, mask_tail):
    c = pl.program_id(0)   # core-split axis ("parallel")
    i = pl.program_id(1)   # streaming reduction axis ("arbitrary")

    @pl.when(i == 0)
    def _init():
        acc_ref[...] = jnp.zeros_like(acc_ref)

    p = inp_ref[...].astype(jnp.float32)
    t = tgt_ref[...].astype(jnp.float32)

    if mask_tail:
        # Zero rows beyond the real data:
        #  * garbage rows of a partial last block (rows % block_rows != 0)
        #  * rows of a clamped duplicate block (when the 2-way core split
        #    does not divide the block count evenly)
        intended_blk = c * blocks_per_core + i
        row0 = intended_blk * block_rows
        rid = row0 + lax.broadcasted_iota(jnp.int32, (block_rows, LANE), 0)
        valid = rid < rows_valid
        p = jnp.where(valid, p, 0.0)
        t = jnp.where(valid, t, 0.0)

    g = block_rows // SUBLANE

    # Per-lane partial sums (pure VPU vreg adds, hidden under the DMA); the
    # expensive cross-lane reduction happens once, in the wrapper epilogue.
    inter = jnp.sum((p * t).reshape(g, SUBLANE, LANE), axis=0)
    sp = jnp.sum(p.reshape(g, SUBLANE, LANE), axis=0)
    st = jnp.sum(t.reshape(g, SUBLANE, LANE), axis=0)

    # BCE matching torch.nn.functional.binary_cross_entropy: log terms are
    # clamped at -100 *before* the multiply, so 0 * log(0) stays 0.
    log_p = jnp.maximum(jnp.log(p), -100.0)
    log_1mp = jnp.maximum(jnp.log(1.0 - p), -100.0)
    bce_el = -(t * log_p + (1.0 - t) * log_1mp)
    bce = jnp.sum(bce_el.reshape(g, SUBLANE, LANE), axis=0)

    # Output block (32,128) stays resident across the inner axis (same block
    # index for every i) -> acts as the accumulator; auto-writeback at end.
    acc_ref[0:8, :] += inter
    acc_ref[8:16, :] += sp
    acc_ref[16:24, :] += st
    acc_ref[24:32, :] += bce


def dice_bce_loss(inputs, targets, smooth=1.0):
    """Pallas implementation of DiceBCELoss.forward (reduction='mean' BCE)."""
    n = inputs.size
    assert targets.size == n

    p = inputs.reshape(-1)
    t = targets.reshape(-1)

    chunk = SUBLANE * LANE
    if n % chunk != 0:
        # Ragged fallback only: zero padding contributes 0 to every sum and
        # 0 to the clamped BCE terms. Common NCHW sizes never hit this.
        n_pad = pl.cdiv(n, chunk) * chunk
        p = jnp.pad(p, (0, n_pad - n))
        t = jnp.pad(t, (0, n_pad - n))

    rows = p.shape[0] // LANE
    # Lane-dense (rows, 128) slab; this reshape is free (metadata only).
    p2 = p.reshape(rows, LANE)
    t2 = t.reshape(rows, LANE)

    block_rows = min(MAX_BLOCK_ROWS, rows)          # multiple of 8 by construction
    blocks_total = pl.cdiv(rows, block_rows)
    ncores = 2 if blocks_total >= 2 else 1          # v7x 2-TC split; harmless on 1-TC chips
    blocks_per_core = pl.cdiv(blocks_total, ncores)
    mask_tail = (rows % block_rows != 0) or (ncores * blocks_per_core != blocks_total)

    def in_index_map(c, i):
        blk = c * blocks_per_core + i
        # Keep overshoot steps in-bounds; their rows are zeroed in-kernel.
        return (jnp.minimum(blk, blocks_total - 1), 0)

    kernel = functools.partial(
        _dice_bce_kernel,
        block_rows=block_rows,
        rows_valid=rows,
        blocks_per_core=blocks_per_core,
        mask_tail=mask_tail,
    )

    out = pl.pallas_call(
        kernel,
        out_shape=jax.ShapeDtypeStruct((ncores * 4 * SUBLANE, LANE), jnp.float32),
        grid_spec=pltpu.PrefetchScalarGridSpec(
            num_scalar_prefetch=0,
            grid=(ncores, blocks_per_core),
            in_specs=[
                pl.BlockSpec((block_rows, LANE), in_index_map),
                pl.BlockSpec((block_rows, LANE), in_index_map),
            ],
            out_specs=pl.BlockSpec((4 * SUBLANE, LANE), lambda c, i: (c, 0)),
        ),
        compiler_params=pltpu.CompilerParams(
            dimension_semantics=("parallel", "arbitrary")),
    )(p2, t2)

    # Epilogue: one tiny cross-lane reduction + scalar math in plain JAX.
    parts = out.reshape(ncores, 4, SUBLANE, LANE).sum(axis=(0, 2, 3))
    inter, sum_p, sum_t, bce_sum = parts[0], parts[1], parts[2], parts[3]
    dice_loss = 1.0 - (2.0 * inter + smooth) / (sum_p + sum_t + smooth)
    bce_mean = bce_sum / float(n)
    return bce_mean + dice_loss


def _reference(inputs, targets, smooth=1.0):
    p = inputs.reshape(-1).astype(jnp.float32)
    t = targets.reshape(-1).astype(jnp.float32)
    intersection = jnp.sum(p * t)
    dice = 1.0 - (2.0 * intersection + smooth) / (jnp.sum(p) + jnp.sum(t) + smooth)
    log_p = jnp.maximum(jnp.log(p), -100.0)
    log_1mp = jnp.maximum(jnp.log(1.0 - p), -100.0)
    bce = jnp.mean(-(t * log_p + (1.0 - t) * log_1mp))
    return bce + dice


if __name__ == "__main__":
    key = jax.random.PRNGKey(0)
    k1, k2 = jax.random.split(key)
    # Inputs are probabilities (as BCE requires), targets are binary masks.
    x = jax.nn.sigmoid(jax.random.normal(k1, (2, 4, 16, 16), jnp.float32))
    y = (jax.random.uniform(k2, (2, 4, 16, 16)) > 0.5).astype(jnp.float32)

    loss = dice_bce_loss(x, y)
    jax.block_until_ready(loss)

    ref = _reference(x, y)
    assert jnp.allclose(loss, ref, rtol=1e-5, atol=1e-5), (loss, ref)
    print("KERNEL_OK")
</pallas_src>

<mosaic_0001>
module attributes {stable_mosaic.version = 11 : i64} {
  func.func @_dice_bce_kernel(%arg0: i32, %arg1: i32, %arg2: memref<16x128xf32, #tpu.memory_space<vmem>>, %arg3: memref<16x128xf32, #tpu.memory_space<vmem>>, %arg4: memref<32x128xf32, #tpu.memory_space<vmem>>) attributes {dimension_semantics = [#tpu.dimension_semantics<parallel>, #tpu.dimension_semantics<arbitrary>], iteration_bounds = array<i64: 1, 1>, scalar_prefetch = 0 : i64, scratch_operands = 0 : i64, tpu.core_type = #tpu.core_type<tc>, window_params = [{transform_indices = @transform_0, window_bounds = array<i64: 16, 128>}, {transform_indices = @transform_1, window_bounds = array<i64: 16, 128>}, {transform_indices = @transform_2, window_bounds = array<i64: 32, 128>}]} {
    %c0_i32 = arith.constant 0 : i32
    %0 = arith.cmpi eq, %arg1, %c0_i32 : i32
    %1 = arith.extui %0 : i1 to i32
    %c0_i32_0 = arith.constant 0 : i32
    %2 = arith.cmpi ne, %1, %c0_i32_0 : i32
    scf.if %2 {
      %cst_25 = arith.constant 0.000000e+00 : f32
      %41 = vector.broadcast %cst_25 : f32 to vector<32x128xf32>
      %c0_26 = arith.constant 0 : index
      %c0_27 = arith.constant 0 : index
      %42 = vector.load %arg4[%c0_26, %c0_27] : memref<32x128xf32, #tpu.memory_space<vmem>>, vector<32x128xf32>
      tpu.vector_store %arg4[%c0_26, %c0_27], %41 {strides = array<i32>} : memref<32x128xf32, #tpu.memory_space<vmem>>, vector<32x128xf32>,
    } else {
    }
    %c0 = arith.constant 0 : index
    %c0_1 = arith.constant 0 : index
    %3 = vector.load %arg2[%c0, %c0_1] : memref<16x128xf32, #tpu.memory_space<vmem>>, vector<16x128xf32>
    %c0_2 = arith.constant 0 : index
    %c0_3 = arith.constant 0 : index
    %4 = vector.load %arg3[%c0_2, %c0_3] : memref<16x128xf32, #tpu.memory_space<vmem>>, vector<16x128xf32>
    %5 = arith.mulf %3, %4 : vector<16x128xf32>
    %6 = vector.shape_cast %5 : vector<16x128xf32> to vector<2x8x128xf32>
    %cst = arith.constant dense<0.000000e+00> : vector<8x128xf32>
    %7 = vector.multi_reduction <add>, %6, %cst [0] : vector<2x8x128xf32> to vector<8x128xf32>
    %8 = vector.shape_cast %3 : vector<16x128xf32> to vector<2x8x128xf32>
    %cst_4 = arith.constant dense<0.000000e+00> : vector<8x128xf32>
    %9 = vector.multi_reduction <add>, %8, %cst_4 [0] : vector<2x8x128xf32> to vector<8x128xf32>
    %10 = vector.shape_cast %4 : vector<16x128xf32> to vector<2x8x128xf32>
    %cst_5 = arith.constant dense<0.000000e+00> : vector<8x128xf32>
    %11 = vector.multi_reduction <add>, %10, %cst_5 [0] : vector<2x8x128xf32> to vector<8x128xf32>
    %12 = math.log %3 : vector<16x128xf32>
    %cst_6 = arith.constant -1.000000e+02 : f32
    %13 = vector.broadcast %cst_6 : f32 to vector<16x128xf32>
    %14 = arith.maximumf %12, %13 : vector<16x128xf32>
    %cst_7 = arith.constant 1.000000e+00 : f32
    %15 = vector.broadcast %cst_7 : f32 to vector<16x128xf32>
    %16 = arith.subf %15, %3 : vector<16x128xf32>
    %17 = math.log %16 : vector<16x128xf32>
    %cst_8 = arith.constant -1.000000e+02 : f32
    %18 = vector.broadcast %cst_8 : f32 to vector<16x128xf32>
    %19 = arith.maximumf %17, %18 : vector<16x128xf32>
    %20 = arith.mulf %4, %14 : vector<16x128xf32>
    %cst_9 = arith.constant 1.000000e+00 : f32
    %21 = vector.broadcast %cst_9 : f32 to vector<16x128xf32>
    %22 = arith.subf %21, %4 : vector<16x128xf32>
    %23 = arith.mulf %22, %19 : vector<16x128xf32>
    %24 = arith.addf %20, %23 : vector<16x128xf32>
    %cst_10 = arith.constant 0.000000e+00 : f32
    %25 = vector.broadcast %cst_10 : f32 to vector<16x128xf32>
    %26 = arith.subf %25, %24 : vector<16x128xf32>
    %27 = vector.shape_cast %26 : vector<16x128xf32> to vector<2x8x128xf32>
    %cst_11 = arith.constant dense<0.000000e+00> : vector<8x128xf32>
    %28 = vector.multi_reduction <add>, %27, %cst_11 [0] : vector<2x8x128xf32> to vector<8x128xf32>
    %c0_12 = arith.constant 0 : index
    %c0_13 = arith.constant 0 : index
    %29 = vector.load %arg4[%c0_12, %c0_13] : memref<32x128xf32, #tpu.memory_space<vmem>>, vector<8x128xf32>
    %30 = arith.addf %29, %7 : vector<8x128xf32>
    %c0_14 = arith.constant 0 : index
    %c0_15 = arith.constant 0 : index
    %31 = vector.load %arg4[%c0_14, %c0_15] : memref<32x128xf32, #tpu.memory_space<vmem>>, vector<8x128xf32>
    tpu.vector_store %arg4[%c0_14, %c0_15], %30 {strides = array<i32>} : memref<32x128xf32, #tpu.memory_space<vmem>>, vector<8x128xf32>,
    %c8 = arith.constant 8 : index
    %c0_16 = arith.constant 0 : index
    %32 = vector.load %arg4[%c8, %c0_16] : memref<32x128xf32, #tpu.memory_space<vmem>>, vector<8x128xf32>
    %33 = arith.addf %32, %9 : vector<8x128xf32>
    %c8_17 = arith.constant 8 : index
    %c0_18 = arith.constant 0 : index
    %34 = vector.load %arg4[%c8_17, %c0_18] : memref<32x128xf32, #tpu.memory_space<vmem>>, vector<8x128xf32>
    tpu.vector_store %arg4[%c8_17, %c0_18], %33 {strides = array<i32>} : memref<32x128xf32, #tpu.memory_space<vmem>>, vector<8x128xf32>,
    %c16 = arith.constant 16 : index
    %c0_19 = arith.constant 0 : index
    %35 = vector.load %arg4[%c16, %c0_19] : memref<32x128xf32, #tpu.memory_space<vmem>>, vector<8x128xf32>
    %36 = arith.addf %35, %11 : vector<8x128xf32>
    %c16_20 = arith.constant 16 : index
    %c0_21 = arith.constant 0 : index
    %37 = vector.load %arg4[%c16_20, %c0_21] : memref<32x128xf32, #tpu.memory_space<vmem>>, vector<8x128xf32>
    tpu.vector_store %arg4[%c16_20, %c0_21], %36 {strides = array<i32>} : memref<32x128xf32, #tpu.memory_space<vmem>>, vector<8x128xf32>,
    %c24 = arith.constant 24 : index
    %c0_22 = arith.constant 0 : index
    %38 = vector.load %arg4[%c24, %c0_22] : memref<32x128xf32, #tpu.memory_space<vmem>>, vector<8x128xf32>
    %39 = arith.addf %38, %28 : vector<8x128xf32>
    %c24_23 = arith.constant 24 : index
    %c0_24 = arith.constant 0 : index
    %40 = vector.load %arg4[%c24_23, %c0_24] : memref<32x128xf32, #tpu.memory_space<vmem>>, vector<8x128xf32>
    tpu.vector_store %arg4[%c24_23, %c0_24], %39 {strides = array<i32>} : memref<32x128xf32, #tpu.memory_space<vmem>>, vector<8x128xf32>,
    return
  }
  func.func @transform_0(%arg0: i32, %arg1: i32) -> (i32, i32) {
    %c1_i32 = arith.constant 1 : i32
    %0 = arith.muli %arg0, %c1_i32 : i32
    %1 = arith.addi %0, %arg1 : i32
    %c0_i32 = arith.constant 0 : i32
    %2 = arith.minsi %1, %c0_i32 : i32
    %c0_i32_0 = arith.constant 0 : i32
    %c0_i32_1 = arith.constant 0 : i32
    return %2, %c0_i32_0 : i32, i32
  }
  func.func @transform_1(%arg0: i32, %arg1: i32) -> (i32, i32) {
    %c1_i32 = arith.constant 1 : i32
    %0 = arith.muli %arg0, %c1_i32 : i32
    %1 = arith.addi %0, %arg1 : i32
    %c0_i32 = arith.constant 0 : i32
    %2 = arith.minsi %1, %c0_i32 : i32
    %c0_i32_0 = arith.constant 0 : i32
    %c0_i32_1 = arith.constant 0 : i32
    return %2, %c0_i32_0 : i32, i32
  }
  func.func @transform_2(%arg0: i32, %arg1: i32) -> (i32, i32) {
    %c0_i32 = arith.constant 0 : i32
    %c0_i32_0 = arith.constant 0 : i32
    return %arg0, %c0_i32 : i32, i32
  }
}

</mosaic_0001>

<bundles_post_ra>
// kernel: tpu_custom_call.1
= control target key start
LH: loop header
LB: loop body
LE: loop exit
PB: predicated region body
PF: predicated region fallthrough
CT: control target
= control target key end

     0   :  { %7 = vsyncpa [#allocation3], 0  ;;  %s254_s0 = inlined_call_operand.hbm [shape: f32[16,128], index: 0, kind: input, shape index: {}]   ;;  %s255_s1 = inlined_call_operand.hbm [shape: f32[16,128], index: 1, kind: input, shape index: {}]   ;;  %s256_s2 = inlined_call_operand.hbm [shape: f32[32,128], index: 2, kind: output, shape index: {}]  }
   0x1   :  { %8 = vsyncpa [#allocation6], 0 }
   0x2   :  { %9 = vsyncpa [#allocation4], 0  ;;  %s216_s9 = smov [#allocation2]  }
   0x3   :  { %s21_s10 = sshll.u32 %s216_s9, 4  ;;  %s22_s10 = int_to_ptr.vmem [resolvable:$true] %s21_s10 }
   0x4   :  { %s158_s11 = scalar_lea.vmem %s22_s10, 256  ;;  %p163_p1 = scmp.lt.s32.totalorder %s22_s10, %s22_s10 }
   0x5   :  { %p159_p0 = scmp.ne.s32.totalorder %s22_s10, %s158_s11  ;;  %p164_p2 = scmp.lt.s32.totalorder %s158_s11, %s158_s11 }
   0x7   :  { %p165_p3 = por %p164_p2, %p163_p1 }
   0x9   :  { %p166_p4 = pnand %p165_p3, %p159_p0 }
   0xb   :  { %169 = shalt.err (!%p166_p4)
}
   0xc   :  { %s217_s12 = smov 128   ;;  %s218_s13 = smov 8  }
   0xd   :  { %27 = dma.hbm_to_vmem [thread:$0]  %s254_s0, 256, %s22_s10, [#allocation3], %s217_s12, %s217_s12, %s218_s13  }
   0xe   :  { %s219_s16 = smov [#allocation5]  }
   0xf   :  { %s39_s17 = sshll.u32 %s219_s16, 4  ;;  %s40_s17 = int_to_ptr.vmem [resolvable:$true] %s39_s17 }
  0x10   :  { %s178_s18 = scalar_lea.vmem %s40_s17, 256  ;;  %p183_p6 = scmp.lt.s32.totalorder %s40_s17, %s40_s17 }
  0x11   :  { %p179_p5 = scmp.ne.s32.totalorder %s40_s17, %s178_s18  ;;  %p184_p7 = scmp.lt.s32.totalorder %s178_s18, %s178_s18 }
  0x13   :  { %p185_p8 = por %p184_p7, %p183_p6 }
  0x15   :  { %p186_p9 = pnand %p185_p8, %p179_p5 }
  0x17   :  { %189 = shalt.err (!%p186_p9)
}
  0x18   :  { %45 = dma.hbm_to_vmem [thread:$0]  %s255_s1, 256, %s40_s17, [#allocation6], %s217_s12, %s217_s12, %s218_s13  }
  0x19   :  { %210 = dma.done.wait [#allocation3], 256  }
  0x1a   :  { %211 = vsyncadd [#allocation3], 4294967040 }
  0x1b   :  { %212 = dma.done.wait [#allocation6], 256  }
  0x1c   :  { %213 = vsyncadd [#allocation6], 4294967040  ;;  %v68_v0 = vld [vmem:[#allocation2] sm:$0xff]  ;;  %v69_v1 = vld [vmem:[#allocation2 + $0x8] sm:$0xff]  ;;  %s220_s0 = smov [#allocation7]  }
  0x1d   :  { %v70_v2 = vld [vmem:[#allocation5] sm:$0xff]  ;;  %v71_v3 = vld [vmem:[#allocation5 + $0x8] sm:$0xff]  ;;  %142 = vlog2.f32 %v68_v0  ;;  %v83_v5 = vsub.f32 1.0, %v68_v0  ;;  %v84_v6 = vsub.f32 1.0, %v69_v1  ;;  %v75_v8 = vadd.f32 %v69_v1, %v68_v0  ;;  %s119_s1 = sshll.u32 %s220_s0, 4  ;;  %s120_s1 = int_to_ptr.vmem [resolvable:$true] %s119_s1 }
  0x1e   :  { %v72_v4 = vmul.f32 %v70_v2, %v68_v0  ;;  %v73_v7 = vmul.f32 %v71_v3, %v69_v1  ;;  %144 = vlog2.f32 %v69_v1  ;;  %v76_v9 = vadd.f32 %v71_v3, %v70_v2  ;;  %s190_s21 = scalar_lea.vmem %s120_s1, 512  ;;  %p195_p11 = scmp.lt.s32.totalorder %s120_s1, %s120_s1 }
  0x1f   :  { %146 = vlog2.f32 %v83_v5  ;;  %107 = vst [vmem:[#allocation7 + $0x8] sm:$0xff] %v75_v8  ;;  %v93_v19 = vsub.f32 1.0, %v70_v2  ;;  %v94_v22 = vsub.f32 1.0, %v71_v3  ;;  %p191_p10 = scmp.ne.s32.totalorder %s120_s1, %s190_s21  ;;  %p196_p12 = scmp.lt.s32.totalorder %s190_s21, %s190_s21 }
  0x20   :  { %v74_v10 = vadd.f32 %v73_v7, %v72_v4  ;;  %148 = vlog2.f32 %v84_v6  ;;  %110 = vst [vmem:[#allocation7 + $0x10] sm:$0xff] %v76_v9 }
  0x21   :  { %p197_p13 = por %p196_p12, %p195_p11 }
  0x22   :  { %104 = vst [vmem:[#allocation7] sm:$0xff] %v74_v10 }
  0x23   :  { %p198_p0 = pnand %p197_p13, %p191_p10 }
  0x2a   :  { %v143_v11 = vpop.eup %142 }
  0x2b   :  { %v145_v12 = vpop.eup %144  ;;  %v78_v13 = vmul.f32 0.6931472, %v143_v11 }
  0x2c   :  { %v147_v14 = vpop.eup %146  ;;  %v80_v15 = vmul.f32 0.6931472, %v145_v12 }
  0x2d   :  { %v149_v16 = vpop.eup %148  ;;  %v81_v17 = vmax.f32 %v78_v13, -100.0  ;;  %v86_v18 = vmul.f32 0.6931472, %v147_v14 }
  0x2e   :  { %v82_v20 = vmax.f32 %v80_v15, -100.0  ;;  %v88_v21 = vmul.f32 0.6931472, %v149_v16 }
  0x2f   :  { %v89_v23 = vmax.f32 %v86_v18, -100.0  ;;  %v91_v24 = vmul.f32 %v81_v17, %v70_v2 }
  0x30   :  { %v90_v25 = vmax.f32 %v88_v21, -100.0  ;;  %v92_v26 = vmul.f32 %v82_v20, %v71_v3 }
  0x31   :  { %v95_v27 = vmul.f32 %v93_v19, %v89_v23 }
  0x32   :  { %v96_v28 = vmul.f32 %v94_v22, %v90_v25 }
  0x33   :  { %v97_v29 = vadd.f32 %v95_v27, %v91_v24 }
  0x34   :  { %v98_v30 = vadd.f32 %v96_v28, %v92_v26 }
  0x35   :  { %v99_v31 = vsub.f32 0.0, %v97_v29 }
  0x36   :  { %v100_v32 = vsub.f32 0.0, %v98_v30 }
  0x38   :  { %v101_v33 = vadd.f32 %v100_v32, %v99_v31 }
  0x3a   :  { %113 = vst [vmem:[#allocation7 + $0x18] sm:$0xff] %v101_v33 }
  0x3b   :  { %201 = shalt.err (!%p198_p0)
}
  0x3c   :  { %125 = dma.vmem_to_hbm [thread:$0]  %s120_s1, 512, %s256_s2, [#allocation4], %s217_s12, %s217_s12, %s218_s13  }
  0x3d   :  { %214 = dma.done.wait [#allocation4], 512  }
  0x3e   :  { %215 = vsyncadd [#allocation4], 4294966784 }
  0x3f   :  { %129 = vsyncpa [#allocation3], 1 }
  0x40   :  { %130 = vsyncpa [#allocation6], 1 }
  0x41   :  { %131 = vsyncpa [#allocation4], 1 }

</bundles_post_ra>
